<compile_context>
chip_gen: v7x
topology: tpu7x:2x2x1
jax: 0.10.0
libtpu: 0.0.40
codegen_flags: <defaults>
</compile_context>

<pallas_src>
import jax
import jax.numpy as jnp
from jax.experimental import pallas as pl
from jax.experimental.pallas import tpu as pltpu


def _round_up(v, m):
    return ((v + m - 1) // m) * m


def fused_gin_kernel(a_ref, x0_ref, w1_ref, b1_ref, w2_ref, b2_ref, eps_ref,
                     bn_scale_ref, bn_shift_ref, o_ref, x_state):
    """One grid step == one GIN layer. x_state (VMEM scratch) carries features across layers."""
    l = pl.program_id(0)
    is_last = l == pl.num_programs(0) - 1

    # Layer 0 seeds the resident state from the HBM input block.
    @pl.when(l == 0)
    def _():
        x_state[...] = x0_ref[...]

    x = x_state[...]                                            # (Np, Fp) f32

    # GIN neighbor sum on the MXU: A @ x   (A[dst, src] = #edges src -> dst, bf16 exact counts)
    agg = jnp.dot(a_ref[...], x.astype(jnp.bfloat16),
                  preferred_element_type=jnp.float32)

    # GINConv combine: h = (1 + eps_l) * x_i + sum_{j in N(i)} x_j
    h = (1.0 + eps_ref[l]) * x + agg

    # 2-layer MLP: Linear -> ReLU -> Linear (bf16 operands, f32 accumulation)
    h1 = jnp.dot(h.astype(jnp.bfloat16), w1_ref[...],
                 preferred_element_type=jnp.float32) + b1_ref[...]
    h1 = jnp.maximum(h1, 0.0)
    y = jnp.dot(h1.astype(jnp.bfloat16), w2_ref[...],
                preferred_element_type=jnp.float32) + b2_ref[...]

    # Hidden layers: BatchNorm1d (eval, folded scale/shift) + leaky_relu(0.01);
    # dropout is identity in eval. Last layer: raw logits.
    @pl.when(jnp.logical_not(is_last))
    def _():
        y_post = y * bn_scale_ref[...] + bn_shift_ref[...]
        x_state[...] = jnp.where(y_post >= 0.0, y_post, 0.01 * y_post)

    @pl.when(is_last)
    def _():
        o_ref[...] = y


def gin_forward(x, edge_index, params):
    """Forward pass of GINNodeClassifier (eval mode) as a single fused Pallas call."""
    N, in_channels = x.shape
    layers = params["layers"]
    L = len(layers)
    hidden = layers[0]["w1"].shape[1]
    out_channels = layers[-1]["w2"].shape[1]

    # Uniform lane-dense feature width and sublane-aligned node count.
    Fp = _round_up(max(in_channels, hidden, out_channels), 128)
    Np = _round_up(N, 8)

    # Dense adjacency with edge multiplicities (padded rows/cols stay zero so padded nodes
    # never contaminate real nodes through aggregation). bf16 is exact for counts <= 256.
    src = edge_index[0]
    dst = edge_index[1]
    A = (jnp.zeros((Np, Np), jnp.float32).at[dst, src].add(1.0)).astype(jnp.bfloat16)

    x_p = jnp.zeros((Np, Fp), jnp.float32).at[:N, :in_channels].set(x)

    def pad2(w, r, c, dtype):
        return jnp.zeros((r, c), dtype).at[:w.shape[0], :w.shape[1]].set(w.astype(dtype))

    # Stack per-layer weights so the layer grid axis indexes them: (L, Fp, Fp) / (L, 1, Fp).
    w1 = jnp.stack([pad2(lp["w1"], Fp, Fp, jnp.bfloat16) for lp in layers])
    b1 = jnp.stack([pad2(lp["b1"], 1, Fp, jnp.float32) for lp in layers])
    w2 = jnp.stack([pad2(lp["w2"], Fp, Fp, jnp.bfloat16) for lp in layers])
    b2 = jnp.stack([pad2(lp["b2"], 1, Fp, jnp.float32) for lp in layers])
    eps = jnp.stack([lp["eps"] for lp in layers]).astype(jnp.float32)          # (L,)

    # Folded eval-mode BatchNorm (shared across the hidden layers); identity on padded lanes.
    bn_scale = jnp.ones((1, Fp), jnp.float32).at[:, :hidden].set(params["bn_scale"])
    bn_shift = jnp.zeros((1, Fp), jnp.float32).at[:, :hidden].set(params["bn_shift"])

    out_p = pl.pallas_call(
        fused_gin_kernel,
        out_shape=jax.ShapeDtypeStruct((Np, Fp), jnp.float32),
        grid=(L,),
        in_specs=[
            pl.BlockSpec((Np, Np), lambda l: (0, 0)),            # A (bf16), resident
            pl.BlockSpec((Np, Fp), lambda l: (0, 0)),            # initial node features
            pl.BlockSpec((None, Fp, Fp), lambda l: (l, 0, 0)),   # W1[l]
            pl.BlockSpec((None, 1, Fp), lambda l: (l, 0, 0)),    # b1[l]
            pl.BlockSpec((None, Fp, Fp), lambda l: (l, 0, 0)),   # W2[l]
            pl.BlockSpec((None, 1, Fp), lambda l: (l, 0, 0)),    # b2[l]
            pl.BlockSpec(memory_space=pltpu.SMEM),               # eps (L,) scalars
            pl.BlockSpec((1, Fp), lambda l: (0, 0)),             # folded BN scale
            pl.BlockSpec((1, Fp), lambda l: (0, 0)),             # folded BN shift
        ],
        out_specs=pl.BlockSpec((Np, Fp), lambda l: (0, 0)),
        scratch_shapes=[pltpu.VMEM((Np, Fp), jnp.float32)],      # resident feature state
        compiler_params=pltpu.CompilerParams(
            dimension_semantics=("arbitrary",)),                 # layers are sequential
    )(A, x_p, w1, b1, w2, b2, eps, bn_scale, bn_shift)

    return out_p[:N, :out_channels]


def init_params(key, in_channels, hidden_dim, out_channels, num_layers):
    """Deterministic synthetic parameters matching GINNodeClassifier.__init__ shapes."""
    layers = []
    dims = [(in_channels, hidden_dim, hidden_dim)]
    dims += [(hidden_dim, hidden_dim, hidden_dim)] * (num_layers - 2)
    dims += [(hidden_dim, hidden_dim, out_channels)]
    for (din, dh, dout) in dims:
        key, k1, k2, k3, k4 = jax.random.split(key, 5)
        layers.append(dict(
            w1=(jax.random.normal(k1, (din, dh), jnp.float32) * 0.1),
            b1=(jax.random.normal(k2, (1, dh), jnp.float32) * 0.01),
            w2=(jax.random.normal(k3, (dh, dout), jnp.float32) * 0.1),
            b2=(jax.random.normal(k4, (1, dout), jnp.float32) * 0.01),
            eps=jnp.zeros((), jnp.float32),   # GINConv eps initialized to 0.0
        ))
    # BatchNorm1d(hidden_dim), eval mode, folded into scale/shift
    key, kg, kb, km, kv = jax.random.split(key, 5)
    gamma = 1.0 + 0.1 * jax.random.normal(kg, (hidden_dim,), jnp.float32)
    beta = 0.1 * jax.random.normal(kb, (hidden_dim,), jnp.float32)
    run_mean = 0.1 * jax.random.normal(km, (hidden_dim,), jnp.float32)
    run_var = 1.0 + 0.1 * jax.random.uniform(kv, (hidden_dim,), jnp.float32)
    bn_eps = 1e-5
    scale = gamma / jnp.sqrt(run_var + bn_eps)
    shift = beta - run_mean * scale
    return dict(layers=layers,
                bn_scale=scale.reshape(1, hidden_dim),
                bn_shift=shift.reshape(1, hidden_dim))


def gin_forward_ref(x, edge_index, params):
    """Pure-JAX f32 reference (eval mode) for correctness checking."""
    N = x.shape[0]
    src, dst = edge_index[0], edge_index[1]
    A = jnp.zeros((N, N), jnp.float32).at[dst, src].add(1.0)
    L = len(params["layers"])
    for li, lp in enumerate(params["layers"]):
        h = (1.0 + lp["eps"]) * x + A @ x
        h1 = jnp.maximum(h @ lp["w1"] + lp["b1"], 0.0)
        y = h1 @ lp["w2"] + lp["b2"]
        if li < L - 1:
            y = y * params["bn_scale"] + params["bn_shift"]
            y = jnp.where(y >= 0.0, y, 0.01 * y)
        x = y
    return x


if __name__ == "__main__":
    N = 128            # nodes
    E = 512            # edges
    IN_CHANNELS = 16
    HIDDEN_DIM = 32
    OUT_CHANNELS = 8
    NUM_LAYERS = 3

    key = jax.random.PRNGKey(0)
    kx, ke, kp = jax.random.split(key, 3)

    x = jax.random.normal(kx, (N, IN_CHANNELS), jnp.float32)
    edge_index = jax.random.randint(ke, (2, E), 0, N, dtype=jnp.int32)
    params = init_params(kp, IN_CHANNELS, HIDDEN_DIM, OUT_CHANNELS, NUM_LAYERS)

    out = gin_forward(x, edge_index, params)
    out = jax.block_until_ready(out)
    assert out.shape == (N, OUT_CHANNELS)
    assert jnp.all(jnp.isfinite(out))

    ref = gin_forward_ref(x, edge_index, params)
    max_err = float(jnp.max(jnp.abs(out - ref)))
    assert max_err < 5e-2, f"mismatch vs reference: max abs err {max_err}"

    print("KERNEL_OK")
</pallas_src>

<mosaic_0001>
module attributes {stable_mosaic.version = 11 : i64} {
  func.func @fused_gin_kernel(%arg0: i32, %arg1: memref<128x128xbf16, #tpu.memory_space<vmem>>, %arg2: memref<128x128xf32, #tpu.memory_space<vmem>>, %arg3: memref<1x128x128xbf16, #tpu.memory_space<vmem>>, %arg4: memref<1x1x128xf32, #tpu.memory_space<vmem>>, %arg5: memref<1x128x128xbf16, #tpu.memory_space<vmem>>, %arg6: memref<1x1x128xf32, #tpu.memory_space<vmem>>, %arg7: memref<3xf32, #tpu.memory_space<smem>>, %arg8: memref<1x128xf32, #tpu.memory_space<vmem>>, %arg9: memref<1x128xf32, #tpu.memory_space<vmem>>, %arg10: memref<128x128xf32, #tpu.memory_space<vmem>>, %arg11: memref<128x128xf32, #tpu.memory_space<vmem>>) attributes {dimension_semantics = [#tpu.dimension_semantics<arbitrary>], iteration_bounds = array<i64: 3>, scalar_prefetch = 0 : i64, scratch_operands = 1 : i64, tpu.core_type = #tpu.core_type<tc>, window_params = [{pipeline_mode = #tpu.pipeline_mode<synchronous>, transform_indices = @transform_0, window_bounds = array<i64: 128, 128>}, {pipeline_mode = #tpu.pipeline_mode<synchronous>, transform_indices = @transform_1, window_bounds = array<i64: 128, 128>}, {transform_indices = @transform_2, window_bounds = array<i64: 1, 128, 128>}, {transform_indices = @transform_3, window_bounds = array<i64: 1, 1, 128>}, {transform_indices = @transform_4, window_bounds = array<i64: 1, 128, 128>}, {transform_indices = @transform_5, window_bounds = array<i64: 1, 1, 128>}, {transform_indices = @transform_6, window_bounds = array<i64: 3>}, {pipeline_mode = #tpu.pipeline_mode<synchronous>, transform_indices = @transform_7, window_bounds = array<i64: 1, 128>}, {pipeline_mode = #tpu.pipeline_mode<synchronous>, transform_indices = @transform_8, window_bounds = array<i64: 1, 128>}, {pipeline_mode = #tpu.pipeline_mode<synchronous>, transform_indices = @transform_9, window_bounds = array<i64: 128, 128>}]} {
    %c2_i32 = arith.constant 2 : i32
    %0 = arith.cmpi eq, %arg0, %c2_i32 : i32
    %c0_i32 = arith.constant 0 : i32
    %1 = arith.cmpi eq, %arg0, %c0_i32 : i32
    %2 = arith.extui %1 : i1 to i32
    %c0_i32_0 = arith.constant 0 : i32
    %3 = arith.cmpi ne, %2, %c0_i32_0 : i32
    scf.if %3 {
      %c0_22 = arith.constant 0 : index
      %c0_23 = arith.constant 0 : index
      %37 = vector.load %arg2[%c0_22, %c0_23] : memref<128x128xf32, #tpu.memory_space<vmem>>, vector<128x128xf32>
      %c0_24 = arith.constant 0 : index
      %c0_25 = arith.constant 0 : index
      %38 = vector.load %arg11[%c0_24, %c0_25] : memref<128x128xf32, #tpu.memory_space<vmem>>, vector<128x128xf32>
      tpu.vector_store %arg11[%c0_24, %c0_25], %37 {strides = array<i32>} : memref<128x128xf32, #tpu.memory_space<vmem>>, vector<128x128xf32>,
    } else {
    }
    %c0 = arith.constant 0 : index
    %c0_1 = arith.constant 0 : index
    %4 = vector.load %arg11[%c0, %c0_1] : memref<128x128xf32, #tpu.memory_space<vmem>>, vector<128x128xf32>
    %c0_2 = arith.constant 0 : index
    %c0_3 = arith.constant 0 : index
    %5 = vector.load %arg1[%c0_2, %c0_3] : memref<128x128xbf16, #tpu.memory_space<vmem>>, vector<128x128xbf16>
    %6 = arith.truncf %4 : vector<128x128xf32> to vector<128x128xbf16>
    %cst = arith.constant dense<0.000000e+00> : vector<128x128xf32>
    %7 = tpu.matmul %5, %6, %cst {dimension_numbers = #tpu.dot_dimension_numbers<[1], [0], [0], [1], [0, 0, 1, 1], [], []>} : vector<128x128xbf16>, vector<128x128xbf16>, vector<128x128xf32> -> vector<128x128xf32>
    %8 = arith.index_cast %arg0 : i32 to index
    %9 = memref.load %arg7[%8] : memref<3xf32, #tpu.memory_space<smem>>
    %cst_4 = arith.constant 1.000000e+00 : f32
    %10 = arith.addf %cst_4, %9 : f32
    %11 = vector.broadcast %10 : f32 to vector<128x128xf32>
    %12 = arith.mulf %11, %4 : vector<128x128xf32>
    %13 = arith.addf %12, %7 : vector<128x128xf32>
    %14 = arith.truncf %13 : vector<128x128xf32> to vector<128x128xbf16>
    %c0_5 = arith.constant 0 : index
    %c0_6 = arith.constant 0 : index
    %c0_7 = arith.constant 0 : index
    %15 = vector.load %arg3[%c0_5, %c0_6, %c0_7] : memref<1x128x128xbf16, #tpu.memory_space<vmem>>, vector<1x128x128xbf16>
    %16 = vector.shape_cast %15 : vector<1x128x128xbf16> to vector<128x128xbf16>
    %cst_8 = arith.constant dense<0.000000e+00> : vector<128x128xf32>
    %17 = tpu.matmul %14, %16, %cst_8 {dimension_numbers = #tpu.dot_dimension_numbers<[1], [0], [0], [1], [0, 0, 1, 1], [], []>} : vector<128x128xbf16>, vector<128x128xbf16>, vector<128x128xf32> -> vector<128x128xf32>
    %c0_9 = arith.constant 0 : index
    %c0_10 = arith.constant 0 : index
    %c0_11 = arith.constant 0 : index
    %18 = vector.load %arg4[%c0_9, %c0_10, %c0_11] : memref<1x1x128xf32, #tpu.memory_space<vmem>>, vector<1x1x128xf32>
    %19 = vector.shape_cast %18 : vector<1x1x128xf32> to vector<1x128xf32>
    %20 = vector.broadcast %19 : vector<1x128xf32> to vector<128x128xf32>
    %21 = arith.addf %17, %20 : vector<128x128xf32>
    %cst_12 = arith.constant 0.000000e+00 : f32
    %22 = vector.broadcast %cst_12 : f32 to vector<128x128xf32>
    %23 = arith.maximumf %21, %22 : vector<128x128xf32>
    %24 = arith.truncf %23 : vector<128x128xf32> to vector<128x128xbf16>
    %c0_13 = arith.constant 0 : index
    %c0_14 = arith.constant 0 : index
    %c0_15 = arith.constant 0 : index
    %25 = vector.load %arg5[%c0_13, %c0_14, %c0_15] : memref<1x128x128xbf16, #tpu.memory_space<vmem>>, vector<1x128x128xbf16>
    %26 = vector.shape_cast %25 : vector<1x128x128xbf16> to vector<128x128xbf16>
    %cst_16 = arith.constant dense<0.000000e+00> : vector<128x128xf32>
    %27 = tpu.matmul %24, %26, %cst_16 {dimension_numbers = #tpu.dot_dimension_numbers<[1], [0], [0], [1], [0, 0, 1, 1], [], []>} : vector<128x128xbf16>, vector<128x128xbf16>, vector<128x128xf32> -> vector<128x128xf32>
    %c0_17 = arith.constant 0 : index
    %c0_18 = arith.constant 0 : index
    %c0_19 = arith.constant 0 : index
    %28 = vector.load %arg6[%c0_17, %c0_18, %c0_19] : memref<1x1x128xf32, #tpu.memory_space<vmem>>, vector<1x1x128xf32>
    %29 = vector.shape_cast %28 : vector<1x1x128xf32> to vector<1x128xf32>
    %30 = vector.broadcast %29 : vector<1x128xf32> to vector<128x128xf32>
    %31 = arith.addf %27, %30 : vector<128x128xf32>
    %true = arith.constant true
    %32 = arith.xori %0, %true : i1
    %33 = arith.extui %32 : i1 to i32
    %c0_i32_20 = arith.constant 0 : i32
    %34 = arith.cmpi ne, %33, %c0_i32_20 : i32
    scf.if %34 {
      %c0_22 = arith.constant 0 : index
      %c0_23 = arith.constant 0 : index
      %37 = vector.load %arg8[%c0_22, %c0_23] : memref<1x128xf32, #tpu.memory_space<vmem>>, vector<1x128xf32>
      %38 = vector.broadcast %37 : vector<1x128xf32> to vector<128x128xf32>
      %39 = arith.mulf %31, %38 : vector<128x128xf32>
      %c0_24 = arith.constant 0 : index
      %c0_25 = arith.constant 0 : index
      %40 = vector.load %arg9[%c0_24, %c0_25] : memref<1x128xf32, #tpu.memory_space<vmem>>, vector<1x128xf32>
      %41 = vector.broadcast %40 : vector<1x128xf32> to vector<128x128xf32>
      %42 = arith.addf %39, %41 : vector<128x128xf32>
      %cst_26 = arith.constant 0.000000e+00 : f32
      %43 = vector.broadcast %cst_26 : f32 to vector<128x128xf32>
      %44 = arith.cmpf oge, %42, %43 : vector<128x128xf32>
      %cst_27 = arith.constant 0.00999999977 : f32
      %45 = vector.broadcast %cst_27 : f32 to vector<128x128xf32>
      %46 = arith.mulf %45, %42 : vector<128x128xf32>
      %47 = arith.select %44, %42, %46 : vector<128x128xi1>, vector<128x128xf32>
      %c0_28 = arith.constant 0 : index
      %c0_29 = arith.constant 0 : index
      %48 = vector.load %arg11[%c0_28, %c0_29] : memref<128x128xf32, #tpu.memory_space<vmem>>, vector<128x128xf32>
      tpu.vector_store %arg11[%c0_28, %c0_29], %47 {strides = array<i32>} : memref<128x128xf32, #tpu.memory_space<vmem>>, vector<128x128xf32>,
    } else {
    }
    %35 = arith.extui %0 : i1 to i32
    %c0_i32_21 = arith.constant 0 : i32
    %36 = arith.cmpi ne, %35, %c0_i32_21 : i32
    scf.if %36 {
      %c0_22 = arith.constant 0 : index
      %c0_23 = arith.constant 0 : index
      %37 = vector.load %arg10[%c0_22, %c0_23] : memref<128x128xf32, #tpu.memory_space<vmem>>, vector<128x128xf32>
      tpu.vector_store %arg10[%c0_22, %c0_23], %31 {strides = array<i32>} : memref<128x128xf32, #tpu.memory_space<vmem>>, vector<128x128xf32>,
    } else {
    }
    return
  }
  func.func @transform_0(%arg0: i32) -> (i32, i32) {
    %c0_i32 = arith.constant 0 : i32
    %c0_i32_0 = arith.constant 0 : i32
    %c0_i32_1 = arith.constant 0 : i32
    return %c0_i32, %c0_i32_0 : i32, i32
  }
  func.func @transform_1(%arg0: i32) -> (i32, i32) {
    %c0_i32 = arith.constant 0 : i32
    %c0_i32_0 = arith.constant 0 : i32
    %c0_i32_1 = arith.constant 0 : i32
    return %c0_i32, %c0_i32_0 : i32, i32
  }
  func.func @transform_2(%arg0: i32) -> (i32, i32, i32) {
    %c0_i32 = arith.constant 0 : i32
    %c0_i32_0 = arith.constant 0 : i32
    %c0_i32_1 = arith.constant 0 : i32
    return %arg0, %c0_i32, %c0_i32_0 : i32, i32, i32
  }
  func.func @transform_3(%arg0: i32) -> (i32, i32, i32) {
    %c0_i32 = arith.constant 0 : i32
    %c0_i32_0 = arith.constant 0 : i32
    %c0_i32_1 = arith.constant 0 : i32
    return %arg0, %c0_i32, %c0_i32_0 : i32, i32, i32
  }
  func.func @transform_4(%arg0: i32) -> (i32, i32, i32) {
    %c0_i32 = arith.constant 0 : i32
    %c0_i32_0 = arith.constant 0 : i32
    %c0_i32_1 = arith.constant 0 : i32
    return %arg0, %c0_i32, %c0_i32_0 : i32, i32, i32
  }
  func.func @transform_5(%arg0: i32) -> (i32, i32, i32) {
    %c0_i32 = arith.constant 0 : i32
    %c0_i32_0 = arith.constant 0 : i32
    %c0_i32_1 = arith.constant 0 : i32
    return %arg0, %c0_i32, %c0_i32_0 : i32, i32, i32
  }
  func.func @transform_6(%arg0: i32) -> i32 {
    %c0_i32 = arith.constant 0 : i32
    %c0_i32_0 = arith.constant 0 : i32
    return %c0_i32 : i32
  }
  func.func @transform_7(%arg0: i32) -> (i32, i32) {
    %c0_i32 = arith.constant 0 : i32
    %c0_i32_0 = arith.constant 0 : i32
    %c0_i32_1 = arith.constant 0 : i32
    return %c0_i32, %c0_i32_0 : i32, i32
  }
  func.func @transform_8(%arg0: i32) -> (i32, i32) {
    %c0_i32 = arith.constant 0 : i32
    %c0_i32_0 = arith.constant 0 : i32
    %c0_i32_1 = arith.constant 0 : i32
    return %c0_i32, %c0_i32_0 : i32, i32
  }
  func.func @transform_9(%arg0: i32) -> (i32, i32) {
    %c0_i32 = arith.constant 0 : i32
    %c0_i32_0 = arith.constant 0 : i32
    %c0_i32_1 = arith.constant 0 : i32
    return %c0_i32, %c0_i32_0 : i32, i32
  }
}

</mosaic_0001>

<bundles_post_ra>
// kernel: tpu_custom_call.1
= control target key start
LH: loop header
LB: loop body
LE: loop exit
PB: predicated region body
PF: predicated region fallthrough
CT: control target
= control target key end

     0   :  { %s2429_s0 = inlined_call_operand.hbm [shape: bf16[128,128], index: 0, kind: input, shape index: {}]   ;;  %s2430_s1 = inlined_call_operand.hbm [shape: f32[128,128], index: 1, kind: input, shape index: {}]   ;;  %s2431_s2 = inlined_call_operand.hbm [shape: bf16[3,128,128], index: 2, kind: input, shape index: {}]   ;;  %s2432_s3 = inlined_call_operand.vmem [shape: f32[3,1,128], index: 3, kind: input, shape index: {}]   ;;  %s2433_s4 = inlined_call_operand.hbm [shape: bf16[3,128,128], index: 4, kind: input, shape index: {}]   ;;  %s2434_s5 = inlined_call_operand.vmem [shape: f32[3,1,128], index: 5, kind: input, shape index: {}]   ;;  %s2435_s6 = inlined_call_operand.vmem [shape: f32[3], index: 6, kind: input, shape index: {}]   ;;  %s2436_s7 = inlined_call_operand.vmem [shape: f32[1,128], index: 7, kind: input, shape index: {}]   ;;  %s2437_s8 = inlined_call_operand.vmem [shape: f32[1,128], index: 8, kind: input, shape index: {}]   ;;  %s2438_s9 = inlined_call_operand.hbm [shape: f32[128,128], index: 9, kind: output, shape index: {}]  }
   0x1   :  { %2455 = sst [smem:[#allocation21_spill]] %s2429_s0 }
   0x2   :  { %2456 = sst [smem:[#allocation22_spill]] %s2431_s2 }
   0x3   :  { %2457 = sst [smem:[#allocation23_spill]] %s2437_s8 }
   0x4   :  { %2458 = sst [smem:[#allocation24_spill]] %s2438_s9 }
   0x5   :  { %14 = vsyncpa [#allocation4], 0 }
   0x6   :  { %15 = vsyncpa [#allocation8], 0 }
   0x7   :  { %16 = vsyncpa [#allocation6], 0 }
   0x8   :  { %17 = vsyncpa [#allocation5], 0  ;;  %s1930_s30 = smov 0   ;;  %s1932_s10 = smov 0  }
   0x9   :  { %s1934_s11 = smov 0   ;;  %s1936_s12 = smov 0  }
   0xa LB: > { %2459 = sst [smem:[#allocation18_spill]] %s1862_s11  ;;  %s1949_s13 = sadd.s32 4294967295, %s1866_s12   ;;  %s1866_s12 = sphi %s1936_s12, %s2490_s12   ;;  %s1862_s11 = sphi %s1934_s11, %s2492_s11   ;;  %s1858_s10 = sphi %s1932_s10, %s2494_s10   ;;  %s1854_s30 = sphi %s1930_s30, %s2493_s30  }
   0xb   : > { %s1952_s14 = sadd.s32 1, %s1866_s12   ;;  %s72_s16 = sadd.s32 1, %s1862_s11 }
   0xc   : > { %2460 = sst [smem:[#allocation19_spill]] %s1952_s14  ;;  %s69_s15 = ssub.s32 %s1866_s12, %s1952_s14 }
   0xd   : > { %p70_p0 = scmp.eq.s32.totalorder %s69_s15, 0  ;;  %p79_p1 = scmp.ne.s32.totalorder %s1862_s11, %s1858_s10 }
   0xe   : > { %p80_p2 = scmp.eq.s32.totalorder %s1866_s12, 0  ;;  %p85_p3 = scmp.ne.s32.totalorder %s1858_s10, %s1854_s30 }
   0xf   : > { %s1962_s17 = scalar_select %p70_p0, %s1862_s11, %s72_s16  }
  0x10   : > { %p1964_p4 = por %p80_p2, %p79_p1  ;;  %p2439_p5 = scmp.eq.s32.totalorder %s1949_s13, 0 }
  0x11   : > { %2461 = sst [smem:[#allocation20_spill]] %s1962_s17  ;;  %p1333_p6 = scmp.ge.s32.totalorder %s1866_s12, 1 }
  0x12   : > { %p258_p7 = scmp.lt.s32.totalorder %s1866_s12, 4  ;;  %p1973_p8 = por %p2439_p5, %p85_p3 }
  0x13   : > { %s1868_s21 = smov [#allocation3]   ;;  %p1587_p13 = scmp.lt.s32.totalorder %s1866_s12, 3 }
  0x14   : > { %s2463_s19 = scalar_select %p1973_p8, 1, 0 }
  0x15   : > { %p1978_p10 = pnand %p1333_p6, %p258_p7  ;;  %s270_s22 = sshll.u32 %s1868_s21, 4  ;;  %s271_s22 = int_to_ptr.vmem [resolvable:$true] %s270_s22 }
  0x16   : > { %s316_s25 = sand.u32 1, %s1862_s11   ;;  %p1995_p0 = pnand %p1587_p13, %p1964_p4 }
  0x17   : > { %s2464_s20 = scalar_select %p1978_p10, 1, 0 }
  0x18   : > { %p1567_p11 = pneg %p1978_p10  ;;  %s2467_s0 = sld [smem:[#allocation21_spill]] }
  0x19   : > { %s2466_s26 = scalar_select %p1995_p0, 1, 0 }
  0x1a   : > { %p1986_p12 = pnand %p1567_p11, %p2439_p5 }
  0x1c   : > { %s2465_s23 = scalar_select %p1986_p12, 1, 0 }
  0x1d   : > { %p2007_p2 = pneg %p1986_p12 }
  0x1e   : > { %s1659_s29 = scalar_lea.hbm %s2467_s0, 1024 }
  0x1f   : > { %p1660_p1 = scmp.ne.s32.totalorder %s2467_s0, %s1659_s29  ;;  %p1666_p6 = scmp.lt.u32.totalorder %s1659_s29, %s2467_s0 }
  0x21   : > { %p1662_p3 = pnand %p2007_p2, %p1660_p1 }
  0x23   : > { %p1663_p4 = pneg %p1662_p3 }
  0x25   : > { %p1668_p7 = pnand %p1666_p6, %p1663_p4 }
  0x27   : > { %1671 = shalt.err (!%p1668_p7)
}
  0x28   : > { %s1672_s27 = scalar_lea.vmem %s271_s22, 1024  ;;  %p1680_p5 = scmp.lt.s32.totalorder %s271_s22, %s271_s22 }
  0x29   : > { %p1673_p11 = scmp.ne.s32.totalorder %s271_s22, %s1672_s27  ;;  %p1681_p8 = scmp.lt.s32.totalorder %s1672_s27, %s1672_s27 }
  0x2b   : > { %p1675_p13 = pnand %p1673_p11, %p2007_p2  ;;  %p1682_p10 = por %p1681_p8, %p1680_p5 }
  0x2d   : > { %p1676_p9 = pneg %p1675_p13 }
  0x2f   : > { %p1683_p0 = pnand %p1682_p10, %p1676_p9 }
  0x31   : > { %1686 = shalt.err (!%p1683_p0)
}
  0x32   : > { %s2446_s28 = smov 64   ;;  %s2449_s29 = smov 4  }
  0x33   : > { %1570 = dma.hbm_to_vmem [thread:$0]  (!%p1986_p12), %s2467_s0, 1024, %s271_s22, [#allocation4], %s2446_s28, %s2446_s28, %s2449_s29  }
  0x34   : > { %s2026_s18 = sshll.u32 %s316_s25, 6  ;;  %s2448_s21 = sshll.u32 %s1866_s12, 10 }
  0x35   : > { %s2469_s2 = sld [smem:[#allocation22_spill]]  ;;  %s318_s11 = scalar_lea.vmem [#allocation9], %s2026_s18 }
  0x36   : > { %s325_s14 = sshll.u32 %s318_s11, 4  ;;  %s1871_s30 = smov [#allocation7]   ;;  %s2037_s14 = int_to_ptr.vmem [resolvable:$true] %s325_s14 }
  0x37   : > { %s2039_s22 = sshll.u32 %s1871_s30, 4  ;;  %s2470_s25 = sand.u32 1, %s1866_s12   ;;  %s284_s22 = int_to_ptr.vmem [resolvable:$true] %s2039_s22 }
  0x38   : > { %s2043_s15 = scalar_lea.sflag [#allocation4], %s2470_s25  ;;  %p2471_p8 = scmp.ne.s32.totalorder %s2466_s26, 0 }
  0x3a   : > { %p2454_p9 = pneg %p2471_p8 }
  0x3b   : > { %s2034_s17 = scalar_lea.hbm %s2469_s2, %s2448_s21  ;;  %s1692_s11 = scalar_lea.hbm %s2469_s2, 3072 }
  0x3c   : > { %s1687_s28 = scalar_lea.hbm %s2034_s17, 1024  ;;  %p1693_p1 = scmp.lt.u32.totalorder %s2034_s17, %s2469_s2 }
  0x3d   : > { %p1688_p5 = scmp.ne.s32.totalorder %s2034_s17, %s1687_s28  ;;  %p1694_p3 = scmp.lt.u32.totalorder %s1692_s11, %s1687_s28 }
  0x3e   : > { %p1696_p6 = scmp.lt.u32.totalorder %s1687_s28, %s2034_s17 }
  0x3f   : > { %p1690_p10 = pnand %p2454_p9, %p1688_p5  ;;  %p1695_p4 = por %p1694_p3, %p1693_p1 }
  0x41   : > { %p1691_p0 = pneg %p1690_p10  ;;  %p1697_p7 = por %p1696_p6, %p1695_p4 }
  0x43   : > { %p1698_p11 = pnand %p1697_p7, %p1691_p0 }
  0x45   : > { %1701 = shalt.err (!%p1698_p11)
}
  0x46   : > { %s1702_s30 = scalar_lea.vmem %s2037_s14, 1024  ;;  %s1872_s25 = smov [#allocation9]  }
  0x47   : > { %p1703_p13 = scmp.ne.s32.totalorder %s2037_s14, %s1702_s30  ;;  %s1707_s24 = sshll.u32 %s1872_s25, 4  ;;  %s1708_s24 = int_to_ptr.vmem [resolvable:$false] %s1707_s24 }
  0x48   : > { %s1709_s29 = scalar_lea.vmem %s1708_s24, 2048  ;;  %p1710_p12 = scmp.lt.s32.totalorder %s2037_s14, %s1708_s24 }
  0x49   : > { %p1705_p5 = pnand %p1703_p13, %p2454_p9  ;;  %p1711_p1 = scmp.lt.s32.totalorder %s1709_s29, %s1702_s30 }
  0x4b   : > { %p1706_p10 = pneg %p1705_p5  ;;  %p1712_p3 = por %p1711_p1, %p1710_p12 }
  0x4d   : > { %p1713_p4 = pnand %p1712_p3, %p1706_p10 }
  0x4f   : > { %1716 = shalt.err (!%p1713_p4)
}
  0x50   : > { %s2472_s28 = smov 4   ;;  %s2473_s21 = smov 64  }
  0x51   : > { %1580 = dma.hbm_to_vmem [thread:$0]  (!%p2471_p8), %s2034_s17, 1024, %s2037_s14, %s2043_s15, %s2473_s21, %s2473_s21, %s2472_s28  }
  0x52   : > { %s297_s25 = sshll.u32 %s2435_s6, 4  ;;  %s1717_s29 = scalar_lea.hbm %s2430_s1, 2048  ;;  %s298_s25 = int_to_ptr.vmem [resolvable:$true] %s297_s25 }
  0x53   : > { %p1718_p12 = scmp.ne.s32.totalorder %s2430_s1, %s1717_s29  ;;  %p1724_p7 = scmp.lt.u32.totalorder %s1717_s29, %s2430_s1 }
  0x55   : > { %p1720_p0 = pnand %p1718_p12, %p2007_p2 }
  0x57   : > { %p1721_p6 = pneg %p1720_p0 }
  0x59   : > { %p1726_p11 = pnand %p1724_p7, %p1721_p6 }
  0x5b   : > { %1729 = shalt.err (!%p1726_p11)
}
  0x5c   : > { %s1730_s14 = scalar_lea.vmem %s284_s22, 2048  ;;  %p1738_p1 = scmp.lt.s32.totalorder %s284_s22, %s284_s22 }
  0x5d   : > { %p1731_p13 = scmp.ne.s32.totalorder %s284_s22, %s1730_s14  ;;  %p1739_p3 = scmp.lt.s32.totalorder %s1730_s14, %s1730_s14 }
  0x5f   : > { %p1733_p5 = pnand %p1731_p13, %p2007_p2  ;;  %p1740_p4 = por %p1739_p3, %p1738_p1 }
  0x61   : > { %p1734_p10 = pneg %p1733_p5 }
  0x63   : > { %p1741_p9 = pnand %p1740_p4, %p1734_p10 }
  0x65   : > { %1744 = shalt.err (!%p1741_p9)
}
  0x66   : > { %s1873_s0 = smov 128   ;;  %s1874_s2 = smov 8  }
  0x67   : > { %p2474_p12 = scmp.ne.s32.totalorder %s2465_s23, 0  ;;  %s1745_s17 = scalar_lea.vmem %s298_s25, 16 }
  0x68   : > { %p1746_p0 = scmp.ne.s32.totalorder %s298_s25, %s1745_s17  ;;  %p1753_p11 = scmp.lt.s32.totalorder %s298_s25, %s298_s25 }
  0x69   : > { %1573 = dma.hbm_to_vmem [thread:$0]  (!%p2474_p12), %s2430_s1, 2048, %s284_s22, [#allocation8], %s1873_s0, %s1873_s0, %s1874_s2  }
  0x6a   : > { %p1748_p6 = pnand %p1746_p0, %p2007_p2  ;;  %p1754_p13 = scmp.lt.s32.totalorder %s1745_s17, %s1745_s17 }
  0x6c   : > { %p1749_p7 = pneg %p1748_p6  ;;  %p1755_p5 = por %p1754_p13, %p1753_p11 }
  0x6e   : > { %p1756_p10 = pnand %p1755_p5, %p1749_p7 }
  0x70   : > { %1759 = shalt.err (!%p1756_p10)
}
  0x71   : > { %s1875_s27 = smov [#allocation11]   ;;  %s2475_s11 = sshll.u32 %s1866_s12, 10 }
  0x72   : > { %1576 = dma.vmem_to_smem (!%p2474_p12), %s298_s25, 16, %s1875_s27, [#allocation6]  }
  0x73   : > { %s2105_s24 = scalar_lea.hbm %s2433_s4, %s2475_s11  ;;  %s345_s16 = scalar_lea.vmem [#allocation10], %s2026_s18 }
  0x74   : > { %s352_s29 = sshll.u32 %s345_s16, 4  ;;  %s1760_s14 = scalar_lea.hbm %s2105_s24, 1024  ;;  %s2108_s29 = int_to_ptr.vmem [resolvable:$true] %s352_s29 }
  0x75   : > { %p1761_p2 = scmp.ne.s32.totalorder %s2105_s24, %s1760_s14  ;;  %p2476_p9 = pneg %p2471_p8 }
  0x76   : > { %s1765_s25 = scalar_lea.hbm %s2433_s4, 3072  ;;  %p1766_p4 = scmp.lt.u32.totalorder %s2105_s24, %s2433_s4 }
  0x77   : > { %p1763_p1 = pnand %p1761_p2, %p2476_p9  ;;  %p1767_p12 = scmp.lt.u32.totalorder %s1765_s25, %s1760_s14 }
  0x78   : > { %p1769_p6 = scmp.lt.u32.totalorder %s1760_s14, %s2105_s24 }
  0x79   : > { %p1764_p3 = pneg %p1763_p1  ;;  %p1768_p0 = por %p1767_p12, %p1766_p4 }
  0x7b   : > { %p1770_p7 = por %p1769_p6, %p1768_p0 }
  0x7d   : > { %p1771_p11 = pnand %p1770_p7, %p1764_p3 }
  0x7f   : > { %1774 = shalt.err (!%p1771_p11)
}
  0x80   : > { %s1775_s18 = scalar_lea.vmem %s2108_s29, 1024  ;;  %p2477_p5 = pmov %p2476_p9 }
  0x81   : > { %p1776_p13 = scmp.ne.s32.totalorder %s2108_s29, %s1775_s18  ;;  %s1876_s8 = smov [#allocation10]  }
  0x82   : > { %s1780_s9 = sshll.u32 %s1876_s8, 4  ;;  %s1781_s9 = int_to_ptr.vmem [resolvable:$false] %s1780_s9 }
  0x83   : > { %p1778_p10 = pnand %p1776_p13, %p2477_p5  ;;  %s1782_s17 = scalar_lea.vmem %s1781_s9, 2048 }
  0x84   : > { %p1783_p9 = scmp.lt.s32.totalorder %s2108_s29, %s1781_s9  ;;  %p1784_p1 = scmp.lt.s32.totalorder %s1782_s17, %s1775_s18 }
  0x85   : > { %p1779_p2 = pneg %p1778_p10 }
  0x86   : > { %p1785_p4 = por %p1784_p1, %p1783_p9 }
  0x88   : > { %p1786_p12 = pnand %p1785_p4, %p1779_p2 }
  0x8a   : > { %1789 = shalt.err (!%p1786_p12)
}
  0x8b   : > { %1583 = dma.hbm_to_vmem [thread:$0]  (!%p2471_p8), %s2105_s24, 1024, %s2108_s29, %s2043_s15, %s2473_s21, %s2473_s21, %s2472_s28  }
  0x8c   : > { %p2478_p3 = scmp.ne.s32.totalorder %s2464_s20, 0 }
  0x8d   : > { %p2479_p0 = scmp.eq.s32.totalorder (!%p2478_p3), %s1949_s13, 0 }
  0x8e   : > { %370 = sbr.rel (%p2478_p3) target bundleno = 941 (0x3ad), region = 56 }
  0x95   : > { %1833 = dma.done.wait (%p2479_p0), [#allocation4], 1024   ;;  %p2480_p6 = pmov %p2479_p0 }
  0x96   : > { %p2481_p7 = pmov %p2479_p0 }
  0x97   : > { %1835 = vsyncadd (%p2480_p6), [#allocation4], 4294966272 }
  0x98   : > { %1837 = dma.done.wait (%p2481_p7), [#allocation8], 2048   ;;  %p2482_p11 = pmov %p2479_p0 }
  0x99   : > { %s380_s26 = sand.u32 1, %s1949_s13   ;;  %s382_s15 = sand.u32 1, %s1858_s10  }
  0x9a   : > { %1839 = vsyncadd (%p2482_p11), [#allocation8], 4294965248  ;;  %s1347_s28 = sshll.u32 %s382_s15, 6  ;;  %s381_s20 = scalar_lea.sflag [#allocation4], %s380_s26 }
  0x9b   : > { %s2149_s21 = scalar_lea.vmem [#allocation9], %s1347_s28  ;;  %p2483_p8 = scmp.ne.s32.totalorder %s2463_s19, 0 }
  0x9d   : > { %1841 = dma.done.wait (%p2483_p8), %s381_s20, 2048  }
  0x9e   : > { %1843 = vsyncadd (%p2483_p8), %s381_s20, 4294965248  ;;  %s2155_s27 = scalar_lea.vmem [#allocation10], %s1347_s28  ;;  %p2484_p13 = pmov %p2479_p0 }
  0x9f   : > { %p2485_p5 = pmov %p2479_p0 }
  0xa0   : > { %1845 = dma.done.wait (%p2484_p13), [#allocation6], 16  }
  0xa1   : > { %1847 = vsyncadd (%p2485_p5), [#allocation6], 4294967280 }
  0xa2   : > { %402 = sfence }
  0xa3   : > { %p439_p10 = scmp.lt.s32.totalorder %s1949_s13, 2  ;;  %p2486_p2 = scmp.ne.s32.totalorder %s1949_s13, 0 }
  0xa4   : > { %v451_v0 = vld [vmem:[#allocation7] sm:$0xff] (!%p2486_p2)  ;;  %v452_v1 = vld [vmem:[#allocation7 + $0x8] sm:$0xff] (!%p2486_p2)  ;;  %v453_v2 = vld [vmem:[#allocation7 + $0x10] sm:$0xff] (!%p2486_p2) }
  0xa5   : > { %s2163_s11 = scalar_select %p439_p10, %s1949_s13, 2 }
  0xa6   : > { %450 = sbr.rel (%p2486_p2) target bundleno = 174 (0xae), region = 80  ;;  %467 = vst [vmem:[#allocation2] sm:$0xff] (!%p2486_p2), %v451_v0  ;;  %468 = vst [vmem:[#allocation2 + $0x8] sm:$0xff] (!%p2486_p2), %v452_v1  ;;  %v454_v3 = vld [vmem:[#allocation7 + $0x18] sm:$0xff] (!%p2486_p2)  ;;  %v455_v4 = vld [vmem:[#allocation7 + $0x20] sm:$0xff] (!%p2486_p2) }
  0xa7   : > { %s441_s19 = scalar_lea.vmem %s2432_s3, %s2163_s11  ;;  %s444_s29 = scalar_lea.vmem %s2434_s5, %s2163_s11  ;;  %469 = vst [vmem:[#allocation2 + $0x10] sm:$0xff] (!%p2486_p2), %v453_v2  ;;  %v456_v5 = vld [vmem:[#allocation7 + $0x28] sm:$0xff] (!%p2486_p2)  ;;  %470 = vst [vmem:[#allocation2 + $0x18] sm:$0xff] (!%p2486_p2), %v454_v3  ;;  %v457_v6 = vld [vmem:[#allocation7 + $0x30] sm:$0xff] (!%p2486_p2) }
  0xa8   : > { %471 = vst [vmem:[#allocation2 + $0x20] sm:$0xff] (!%p2486_p2), %v455_v4  ;;  %472 = vst [vmem:[#allocation2 + $0x28] sm:$0xff] (!%p2486_p2), %v456_v5  ;;  %v458_v7 = vld [vmem:[#allocation7 + $0x38] sm:$0xff] (!%p2486_p2)  ;;  %v459_v8 = vld [vmem:[#allocation7 + $0x40] sm:$0xff] (!%p2486_p2) }
  0xa9   : > { %473 = vst [vmem:[#allocation2 + $0x30] sm:$0xff] (!%p2486_p2), %v457_v6  ;;  %474 = vst [vmem:[#allocation2 + $0x38] sm:$0xff] (!%p2486_p2), %v458_v7  ;;  %v460_v9 = vld [vmem:[#allocation7 + $0x48] sm:$0xff] (!%p2486_p2)  ;;  %v461_v10 = vld [vmem:[#allocation7 + $0x50] sm:$0xff] (!%p2486_p2) }
  0xaa   : > { %475 = vst [vmem:[#allocation2 + $0x40] sm:$0xff] (!%p2486_p2), %v459_v8  ;;  %v462_v11 = vld [vmem:[#allocation7 + $0x58] sm:$0xff] (!%p2486_p2)  ;;  %476 = vst [vmem:[#allocation2 + $0x48] sm:$0xff] (!%p2486_p2), %v460_v9  ;;  %v463_v12 = vld [vmem:[#allocation7 + $0x60] sm:$0xff] (!%p2486_p2) }
  0xab   : > { %477 = vst [vmem:[#allocation2 + $0x50] sm:$0xff] (!%p2486_p2), %v461_v10  ;;  %478 = vst [vmem:[#allocation2 + $0x58] sm:$0xff] (!%p2486_p2), %v462_v11  ;;  %v464_v13 = vld [vmem:[#allocation7 + $0x68] sm:$0xff] (!%p2486_p2)  ;;  %v465_v14 = vld [vmem:[#allocation7 + $0x70] sm:$0xff] (!%p2486_p2) }
  0xac   : > { %479 = vst [vmem:[#allocation2 + $0x60] sm:$0xff] (!%p2486_p2), %v463_v12  ;;  %480 = vst [vmem:[#allocation2 + $0x68] sm:$0xff] (!%p2486_p2), %v464_v13  ;;  %v466_v15 = vld [vmem:[#allocation7 + $0x78] sm:$0xff] (!%p2486_p2) }
  0xad   : > { %481 = vst [vmem:[#allocation2 + $0x70] sm:$0xff] %v465_v14  ;;  %482 = vst [vmem:[#allocation2 + $0x78] sm:$0xff] %v466_v15 }
  0xae PF: > { %v2175_v16 = vld [vmem:[#allocation2] sm:$0xff]  ;;  %v2177_v17 = vld [vmem:[#allocation2 + $0x8] sm:$0xff]  ;;  %v1645_v39 = vld [vmem:[%s2149_s21 + $0x10] sm:$0xff]   ;;  %s668_s14 = sld [smem:[#allocation11 + %s1949_s13]]  ;;  %p1377_p9 = scmp.eq.s32.totalorder %s1949_s13, 2 }
  0xaf   : > { %v2179_v18 = vld [vmem:[#allocation2 + $0x10] sm:$0xff]  ;;  %v515_v19 = vpack.c.bf16 %v2177_v17, %v2175_v16  ;;  %v2183_v20 = vld [vmem:[#allocation2 + $0x18] sm:$0xff]  ;;  %v1635_v27 = vld [vmem:[#allocation3] sm:$0xff]   ;;  %s2487_s26 = sld [smem:[#allocation23_spill]] (!%p1377_p9) }
  0xb0   : > { %v516_v21 = vpack.c.bf16 %v2183_v20, %v2179_v18  ;;  %v2187_v22 = vld [vmem:[#allocation2 + $0x20] sm:$0xff]  ;;  %v2189_v23 = vld [vmem:[#allocation2 + $0x28] sm:$0xff]  ;;  %1451 = vmatprep.mubr.bf16.mxu0 %v1635_v27  ;;  %v1646_v42 = vld [vmem:[%s2149_s21 + $0x18] sm:$0xff]  }
  0xb1   : > { %1435 = vmatprep.subr.bf16.mxu0 %v515_v19  ;;  %v2191_v24 = vld [vmem:[#allocation2 + $0x30] sm:$0xff]  ;;  %v517_v25 = vpack.c.bf16 %v2189_v23, %v2187_v22  ;;  %v2195_v26 = vld [vmem:[#allocation2 + $0x38] sm:$0xff]  ;;  %v1643_v34 = vld [vmem:[%s2149_s21] sm:$0xff]  }
  0xb2   : > { %1436 = vmatpush3.bf16.msra.mxu0 %v515_v19  ;;  %v518_v28 = vpack.c.bf16 %v2195_v26, %v2191_v24  ;;  %v2199_v29 = vld [vmem:[#allocation2 + $0x40] sm:$0xff]  ;;  %v2201_v30 = vld [vmem:[#allocation2 + $0x48] sm:$0xff]  ;;  %1467 = vmatprep.subr.bf16.mxu1 %v1643_v34  ;;  %v1637_v48 = vld [vmem:[#allocation3 + $0x10] sm:$0xff]  }
  0xb3   : > { %1437 = vmatprep.subr.bf16.mxu0 %v516_v21  ;;  %v2203_v31 = vld [vmem:[#allocation2 + $0x50] sm:$0xff]  ;;  %v519_v32 = vpack.c.bf16 %v2201_v30, %v2199_v29  ;;  %v2207_v33 = vld [vmem:[#allocation2 + $0x58] sm:$0xff]  ;;  %v1644_v35 = vld [vmem:[%s2149_s21 + $0x8] sm:$0xff]   ;;  %1468 = vmatpush3.bf16.msra.mxu1 %v1643_v34 }
  0xb4   : > { %v2211_v36 = vld [vmem:[#allocation2 + $0x60] sm:$0xff]  ;;  %v520_v37 = vpack.c.bf16 %v2207_v33, %v2203_v31  ;;  %v2215_v38 = vld [vmem:[#allocation2 + $0x68] sm:$0xff]  ;;  %1469 = vmatprep.subr.bf16.mxu1 %v1644_v35  ;;  %v2218_v40 = vld [vmem:[#allocation2 + $0x70] sm:$0xff]  ;;  %s669_s12 = sadd.f32 1.0, %s668_s14 }
  0xb5   : > { %v2220_v41 = vld [vmem:[#allocation2 + $0x78] sm:$0xff]  ;;  %v521_v43 = vpack.c.bf16 %v2215_v38, %v2211_v36  ;;  %v1647_v45 = vld [vmem:[%s2149_s21 + $0x20] sm:$0xff]   ;;  %v1648_v46 = vld [vmem:[%s2149_s21 + $0x28] sm:$0xff]  }
  0xb6   : > { %1438 = vmatpush3.bf16.msra.mxu0 %v516_v21  ;;  %v522_v44 = vpack.c.bf16 %v2220_v41, %v2218_v40  ;;  %v1636_v47 = vld [vmem:[#allocation3 + $0x8] sm:$0xff]   ;;  %v1638_v49 = vld [vmem:[#allocation3 + $0x18] sm:$0xff]   ;;  %v1639_v50 = vld [vmem:[#allocation3 + $0x20] sm:$0xff]   ;;  %v670_v62 = vstv %s669_s12 }
  0xb7   : > { %1439 = vmatprep.subr.bf16.mxu0 %v517_v25  ;;  %1470 = vmatpush3.bf16.msra.mxu1 %v1644_v35  ;;  %v1640_v51 = vld [vmem:[#allocation3 + $0x28] sm:$0xff]   ;;  %v1641_v52 = vld [vmem:[#allocation3 + $0x30] sm:$0xff]   ;;  %v1642_v53 = vld [vmem:[#allocation3 + $0x38] sm:$0xff]   ;;  %v673_v63 = vmul.f32 %v670_v62, %v2179_v18  ;;  %v674_v0 = vmul.f32 %v670_v62, %v2183_v20  ;;  %v671_v2 = vmul.f32 %v670_v62, %v2175_v16 }
  0xb8   : > { %1471 = vmatprep.subr.bf16.mxu1 %v1645_v39  ;;  %v1649_v54 = vld [vmem:[%s2149_s21 + $0x30] sm:$0xff]   ;;  %v1650_v55 = vld [vmem:[%s2149_s21 + $0x38] sm:$0xff]   ;;  %v1651_v56 = vld [vmem:[%s2155_s27] sm:$0xff]   ;;  %v672_v3 = vmul.f32 %v670_v62, %v2177_v17  ;;  %v677_v13 = vmul.f32 %v670_v62, %v2191_v24  ;;  %v678_v14 = vmul.f32 %v670_v62, %v2195_v26  ;;  %v675_v18 = vmul.f32 %v670_v62, %v2187_v22 }
  0xb9   : > { %v1652_v57 = vld [vmem:[%s2155_s27 + $0x8] sm:$0xff]   ;;  %v1653_v58 = vld [vmem:[%s2155_s27 + $0x10] sm:$0xff]   ;;  %v2235_v59 = vld [vmem:[%s2155_s27 + $0x18] sm:$0xff]   ;;  %v676_v16 = vmul.f32 %v670_v62, %v2189_v23  ;;  %v681_v26 = vmul.f32 %v670_v62, %v2203_v31  ;;  %v682_v34 = vmul.f32 %v670_v62, %v2207_v33  ;;  %v679_v23 = vmul.f32 %v670_v62, %v2199_v29 }
  0xba   : > { %1440 = vmatpush3.bf16.msra.mxu0 %v517_v25  ;;  %v2239_v60 = vld [vmem:[%s2155_s27 + $0x20] sm:$0xff]   ;;  %v2244_v61 = vld [vmem:[%s2155_s27 + $0x28] sm:$0xff]   ;;  %v680_v35 = vmul.f32 %v670_v62, %v2201_v30  ;;  %v686_v29 = vmul.f32 %v670_v62, %v2220_v41 }
  0xbb   : > { %1441 = vmatprep.subr.bf16.mxu0 %v518_v28  ;;  %1472 = vmatpush3.bf16.msra.mxu1 %v1645_v39 }
  0xbc   : > { %1473 = vmatprep.subr.bf16.mxu1 %v1646_v42 }
  0xbe   : > { %1442 = vmatpush3.bf16.msra.mxu0 %v518_v28 }
  0xbf   : > { %1443 = vmatprep.subr.bf16.mxu0 %v519_v32  ;;  %1474 = vmatpush3.bf16.msra.mxu1 %v1646_v42 }
  0xc0   : > { %1475 = vmatprep.subr.bf16.mxu1 %v1647_v45 }
  0xc2   : > { %1444 = vmatpush3.bf16.msra.mxu0 %v519_v32 }
  0xc3   : > { %1445 = vmatprep.subr.bf16.mxu0 %v520_v37  ;;  %1476 = vmatpush3.bf16.msra.mxu1 %v1647_v45 }
  0xc4   : > { %1477 = vmatprep.subr.bf16.mxu1 %v1648_v46 }
  0xc6   : > { %1446 = vmatpush3.bf16.msra.mxu0 %v520_v37 }
  0xc7   : > { %1447 = vmatprep.subr.bf16.mxu0 %v521_v43  ;;  %1478 = vmatpush3.bf16.msra.mxu1 %v1648_v46 }
  0xc8   : > { %1479 = vmatprep.subr.bf16.mxu1 %v1649_v54 }
  0xca   : > { %1448 = vmatpush3.bf16.msra.mxu0 %v521_v43 }
  0xcb   : > { %1449 = vmatprep.subr.bf16.mxu0 %v522_v44  ;;  %1480 = vmatpush3.bf16.msra.mxu1 %v1649_v54 }
  0xcc   : > { %1481 = vmatprep.subr.bf16.mxu1 %v1650_v55 }
  0xce   : > { %1450 = vmatpush3.bf16.msra.mxu0 %v522_v44 }
  0xcf   : > { %1482 = vmatpush3.bf16.msra.mxu1 %v1650_v55  ;;  %1499 = vmatprep.subr.bf16.mxu0 %v1651_v56 }
  0xd0   : > { %1531 = vmatprep.subr.bf16.mxu1 %v1651_v56 }
  0xd1   : > { %1452 = vmatmul.mubr.bf16.vlgmr.msra.gmra.mrb[0].mxu0 %v1636_v47  ;;  %v685_v47 = vmul.f32 %v670_v62, %v2218_v40 }
  0xd2   : > { %1455 = vmatprep.mubr.bf16.mxu0 %v1637_v48  ;;  %1500 = vmatpush3.bf16.msra.mxu0 %v1651_v56  ;;  %v683_v48 = vmul.f32 %v670_v62, %v2211_v36  ;;  %v1657_v36 = vld [vmem:[%s2155_s27 + $0x30] sm:$0xff]  }
  0xd3   : > { %1501 = vmatprep.subr.bf16.mxu0 %v1652_v57 }
  0xd6   : > { %1502 = vmatpush3.bf16.msra.mxu0 %v1652_v57 }
  0xd7   : > { %1503 = vmatprep.subr.bf16.mxu0 %v1653_v58 }
  0xd9   : > { %1456 = vmatmul.mubr.bf16.gmra.mrb[4].mxu0 %v1638_v49  ;;  %v684_v49 = vmul.f32 %v670_v62, %v2215_v38  ;;  %v1658_v38 = vld [vmem:[%s2155_s27 + $0x38] sm:$0xff]  }
  0xda   : > { %1459 = vmatprep.mubr.bf16.mxu0 %v1639_v50  ;;  %1504 = vmatpush3.bf16.msra.mxu0 %v1653_v58 }
  0xdb   : > { %1505 = vmatprep.subr.bf16.mxu0 %v2235_v59 }
  0xde   : > { %1506 = vmatpush3.bf16.msra.mxu0 %v2235_v59 }
  0xdf   : > { %1507 = vmatprep.subr.bf16.mxu0 %v2239_v60 }
  0xe1   : > { %1460 = vmatmul.mubr.bf16.gmra.mrb[8].mxu0 %v1640_v51 }
  0xe2   : > { %1463 = vmatprep.mubr.bf16.mxu0 %v1641_v52  ;;  %1508 = vmatpush3.bf16.msra.mxu0 %v2239_v60 }
  0xe3   : > { %1509 = vmatprep.subr.bf16.mxu0 %v2244_v61 }
  0xe6   : > { %1510 = vmatpush3.bf16.msra.mxu0 %v2244_v61 }
  0xe7   : > { %1511 = vmatprep.subr.bf16.mxu0 %v1657_v36 }
  0xe9   : > { %1464 = vmatmul.mubr.bf16.gmra.mrb[12].mxu0 %v1642_v53 }
  0xea   : > { %1512 = vmatpush3.bf16.msra.mxu0 %v1657_v36 }
  0xeb   : > { %1513 = vmatprep.subr.bf16.mxu0 %v1658_v38 }
  0xee   : > { %1514 = vmatpush3.bf16.msra.mxu0 %v1658_v38 }
 0x1a4   : > { %v1453_v1 = vpop.f32.mrb[0].mxu0 }
 0x1a5   : > { %v605_v4 = vpop.f32.mrb[1].mxu0  ;;  %v689_v6 = vadd.f32 %v1453_v1, %v673_v63 }
 0x1a6   : > { %v1454_v5 = vpop.f32.mrb[2].mxu0  ;;  %v687_v9 = vadd.f32 %v671_v2, %v605_v4 }
 0x1a7   : > { %v690_v7 = vadd.f32 %v1454_v5, %v674_v0  ;;  %v608_v8 = vpop.f32.mrb[3].mxu0 }
 0x1a8   : > { %v688_v10 = vadd.f32 %v672_v3, %v608_v8 }
 0x1a9   : > { %v704_v11 = vpack.c.bf16 %v690_v7, %v689_v6 }
 0x1aa   : > { %v703_v12 = vpack.c.bf16 %v688_v10, %v687_v9 }
 0x1ac   : > { %v1457_v15 = vpop.f32.mrb[4].mxu0  ;;  %1483 = vmatprep.mubr.bf16.mxu1 %v703_v12 }
 0x1ad   : > { %v621_v17 = vpop.f32.mrb[5].mxu0  ;;  %1484 = vmatmul.mubr.bf16.vlgmr.msra.gmra.mrb[0].mxu1 %v704_v11  ;;  %v693_v20 = vadd.f32 %v1457_v15, %v677_v13 }
 0x1ae   : > { %v1458_v19 = vpop.f32.mrb[6].mxu0  ;;  %1539 = vmatpush3.bf16.msra.mxu1 %v1651_v56  ;;  %v691_v27 = vadd.f32 %v675_v18, %v621_v17 }
 0x1af   : > { %v694_v21 = vadd.f32 %v1458_v19, %v678_v14  ;;  %v624_v25 = vpop.f32.mrb[7].mxu0  ;;  %1532 = vmatprep.subr.bf16.mxu1 %v1652_v57 }
 0x1b0   : > { %v692_v28 = vadd.f32 %v676_v16, %v624_v25 }
 0x1b1   : > { %v706_v32 = vpack.c.bf16 %v694_v21, %v693_v20 }
 0x1b2   : > { %v705_v24 = vpack.c.bf16 %v692_v28, %v691_v27  ;;  %1540 = vmatpush3.bf16.msra.mxu1 %v1652_v57  ;;  %v1359_v57 = vld [vmem:[%s441_s19] ss:$0 sm:$0xff] }
 0x1b3   : > { %1533 = vmatprep.subr.bf16.mxu1 %v1653_v58 }
 0x1b4   : > { %v1461_v22 = vpop.f32.mrb[8].mxu0  ;;  %1487 = vmatprep.mubr.bf16.mxu1 %v705_v24 }
 0x1b5   : > { %v637_v37 = vpop.f32.mrb[9].mxu0  ;;  %1488 = vmatmul.mubr.bf16.gmra.mrb[4].mxu1 %v706_v32  ;;  %v697_v42 = vadd.f32 %v1461_v22, %v681_v26 }
 0x1b6   : > { %v1462_v39 = vpop.f32.mrb[10].mxu0  ;;  %1541 = vmatpush3.bf16.msra.mxu1 %v1653_v58  ;;  %v695_v45 = vadd.f32 %v679_v23, %v637_v37 }
 0x1b7   : > { %v698_v43 = vadd.f32 %v1462_v39, %v682_v34  ;;  %v640_v44 = vpop.f32.mrb[11].mxu0  ;;  %1534 = vmatprep.subr.bf16.mxu1 %v2235_v59 }
 0x1b8   : > { %v696_v31 = vadd.f32 %v680_v35, %v640_v44 }
 0x1b9   : > { %v708_v46 = vpack.c.bf16 %v698_v43, %v697_v42 }
 0x1ba   : > { %v707_v33 = vpack.c.bf16 %v696_v31, %v695_v45  ;;  %1542 = vmatpush3.bf16.msra.mxu1 %v2235_v59 }
 0x1bb   : > { %1535 = vmatprep.subr.bf16.mxu1 %v2239_v60 }
 0x1bc   : > { %v1465_v30 = vpop.f32.mrb[12].mxu0  ;;  %1491 = vmatprep.mubr.bf16.mxu1 %v707_v33 }
 0x1bd   : > { %v653_v50 = vpop.f32.mrb[13].mxu0  ;;  %1492 = vmatmul.mubr.bf16.gmra.mrb[8].mxu1 %v708_v46  ;;  %v701_v52 = vadd.f32 %v1465_v30, %v685_v47 }
 0x1be   : > { %v1466_v51 = vpop.f32.mrb[14].mxu0  ;;  %1543 = vmatpush3.bf16.msra.mxu1 %v2239_v60  ;;  %v699_v41 = vadd.f32 %v683_v48, %v653_v50 }
 0x1bf   : > { %v702_v53 = vadd.f32 %v1466_v51, %v686_v29  ;;  %v656_v40 = vpop.f32.mrb[15].mxu0  ;;  %1536 = vmatprep.subr.bf16.mxu1 %v2244_v61 }
 0x1c0   : > { %v700_v54 = vadd.f32 %v684_v49, %v656_v40  ;;  %v1368_v40 = vld [vmem:[%s444_s29] ss:$0 sm:$0xff] }
 0x1c1   : > { %v710_v55 = vpack.c.bf16 %v702_v53, %v701_v52 }
 0x1c2   : > { %v709_v56 = vpack.c.bf16 %v700_v54, %v699_v41  ;;  %1544 = vmatpush3.bf16.msra.mxu1 %v2244_v61 }
 0x1c3   : > { %1537 = vmatprep.subr.bf16.mxu1 %v1657_v36 }
 0x1c4   : > { %1495 = vmatprep.mubr.bf16.mxu1 %v709_v56 }
 0x1c5   : > { %1496 = vmatmul.mubr.bf16.gmra.mrb[12].mxu1 %v710_v55 }
 0x1c6   : > { %1545 = vmatpush3.bf16.msra.mxu1 %v1657_v36 }
 0x1c7   : > { %1538 = vmatprep.subr.bf16.mxu1 %v1658_v38 }
 0x1ca   : > { %1546 = vmatpush3.bf16.msra.mxu1 %v1658_v38 }
 0x280   : > { %v1485_v58 = vpop.f32.mrb[0].mxu1 }
 0x281   : > { %v825_v59 = vadd.f32 %v1485_v58, %v1359_v57  ;;  %v816_v60 = vpop.f32.mrb[1].mxu1 }
 0x282   : > { %v817_v61 = vadd.f32 %v1359_v57, %v816_v60  ;;  %v1486_v62 = vpop.f32.mrb[2].mxu1 }
 0x283   : > { %v828_v63 = vadd.f32 %v1486_v62, %v1359_v57  ;;  %v819_v0 = vpop.f32.mrb[3].mxu1  ;;  %v881_v2 = vmax.f32 %v825_v59, 0.0 }
 0x284   : > { %v820_v1 = vadd.f32 %v1359_v57, %v819_v0  ;;  %v879_v4 = vmax.f32 %v817_v61, 0.0 }
 0x285   : > { %v882_v3 = vmax.f32 %v828_v63, 0.0 }
 0x286   : > { %v880_v5 = vmax.f32 %v820_v1, 0.0 }
 0x287   : > { %v896_v6 = vpack.c.bf16 %v882_v3, %v881_v2 }
 0x288   : > { %v895_v7 = vpack.c.bf16 %v880_v5, %v879_v4  ;;  %v1489_v8 = vpop.f32.mrb[4].mxu1 }
 0x289   : > { %v841_v9 = vadd.f32 %v1489_v8, %v1359_v57  ;;  %v832_v10 = vpop.f32.mrb[5].mxu1 }
 0x28a   : > { %v833_v11 = vadd.f32 %v1359_v57, %v832_v10  ;;  %v1490_v12 = vpop.f32.mrb[6].mxu1  ;;  %1515 = vmatprep.mubr.bf16.mxu0 %v895_v7 }
 0x28b   : > { %v844_v13 = vadd.f32 %v1490_v12, %v1359_v57  ;;  %v835_v14 = vpop.f32.mrb[7].mxu1  ;;  %1516 = vmatmul.mubr.bf16.vlgmr.msra.gmra.mrb[16].mxu0 %v896_v6  ;;  %v885_v18 = vmax.f32 %v841_v9, 0.0 }
 0x28c   : > { %v836_v15 = vadd.f32 %v1359_v57, %v835_v14  ;;  %v883_v17 = vmax.f32 %v833_v11, 0.0 }
 0x28d   : > { %v886_v16 = vmax.f32 %v844_v13, 0.0 }
 0x28e   : > { %v884_v19 = vmax.f32 %v836_v15, 0.0 }
 0x28f   : > { %v898_v20 = vpack.c.bf16 %v886_v16, %v885_v18 }
 0x290   : > { %v897_v21 = vpack.c.bf16 %v884_v19, %v883_v17  ;;  %v1493_v25 = vpop.f32.mrb[8].mxu1  ;;  %v2322_v19 = vld [vmem:[%s2436_s7] ss:$0 sm:$0xff] (!%p1377_p9) }
 0x291   : > { %v857_v27 = vadd.f32 %v1493_v25, %v1359_v57  ;;  %v848_v28 = vpop.f32.mrb[9].mxu1 }
 0x292   : > { %v849_v32 = vadd.f32 %v1359_v57, %v848_v28  ;;  %v1494_v24 = vpop.f32.mrb[10].mxu1  ;;  %1519 = vmatprep.mubr.bf16.mxu0 %v897_v21 }
 0x293   : > { %v860_v26 = vadd.f32 %v1494_v24, %v1359_v57  ;;  %v851_v34 = vpop.f32.mrb[11].mxu1  ;;  %1520 = vmatmul.mubr.bf16.gmra.mrb[20].mxu0 %v898_v20  ;;  %v889_v23 = vmax.f32 %v857_v27, 0.0  ;;  %v2327_v20 = vld [vmem:[%s2487_s26] ss:$0 sm:$0xff] (!%p1377_p9) }
 0x294   : > { %v852_v22 = vadd.f32 %v1359_v57, %v851_v34  ;;  %v887_v37 = vmax.f32 %v849_v32, 0.0 }
 0x295   : > { %v890_v35 = vmax.f32 %v860_v26, 0.0 }
 0x296   : > { %v888_v39 = vmax.f32 %v852_v22, 0.0 }
 0x297   : > { %v900_v42 = vpack.c.bf16 %v890_v35, %v889_v23 }
 0x298   : > { %v899_v43 = vpack.c.bf16 %v888_v39, %v887_v37  ;;  %v1497_v44 = vpop.f32.mrb[12].mxu1 }
 0x299   : > { %v873_v45 = vadd.f32 %v1497_v44, %v1359_v57  ;;  %v864_v31 = vpop.f32.mrb[13].mxu1 }
 0x29a   : > { %v865_v46 = vadd.f32 %v1359_v57, %v864_v31  ;;  %v1498_v33 = vpop.f32.mrb[14].mxu1  ;;  %1523 = vmatprep.mubr.bf16.mxu1 %v899_v43 }
 0x29b   : > { %v876_v47 = vadd.f32 %v1498_v33, %v1359_v57  ;;  %v867_v29 = vpop.f32.mrb[15].mxu1  ;;  %1524 = vmatmul.mubr.bf16.vlgmr.msra.gmra.mrb[16].mxu1 %v900_v42  ;;  %v893_v48 = vmax.f32 %v873_v45, 0.0 }
 0x29c   : > { %v868_v30 = vadd.f32 %v1359_v57, %v867_v29  ;;  %v891_v50 = vmax.f32 %v865_v46, 0.0 }
 0x29d   : > { %v894_v49 = vmax.f32 %v876_v47, 0.0 }
 0x29e   : > { %v892_v51 = vmax.f32 %v868_v30, 0.0 }
 0x29f   : > { %v902_v52 = vpack.c.bf16 %v894_v49, %v893_v48 }
 0x2a0   : > { %v901_v53 = vpack.c.bf16 %v892_v51, %v891_v50 }
 0x2a2   : > { %1527 = vmatprep.mubr.bf16.mxu1 %v901_v53 }
 0x2a3   : > { %1528 = vmatmul.mubr.bf16.gmra.mrb[20].mxu1 %v902_v52 }
 0x35e   : > { %v1517_v41 = vpop.f32.mrb[16].mxu0 }
 0x35f   : > { %v2284_v54 = vadd.f32 %v1517_v41, %v1368_v40  ;;  %v1008_v55 = vpop.f32.mrb[17].mxu0 }
 0x360   : > { %v2286_v56 = vadd.f32 %v1368_v40, %v1008_v55  ;;  %v1518_v36 = vpop.f32.mrb[18].mxu0 }
 0x361   : > { %v2288_v38 = vadd.f32 %v1518_v36, %v1368_v40  ;;  %v1011_v57 = vpop.f32.mrb[19].mxu0  ;;  %v1084_v27 = vmul.f32 (!%p1377_p9), %v2322_v19, %v2284_v54 }
 0x362   : > { %v2290_v58 = vadd.f32 %v1368_v40, %v1011_v57  ;;  %v1082_v21 = vmul.f32 (!%p1377_p9), %v2322_v19, %v2286_v56 }
 0x363   : > { %v1085_v28 = vmul.f32 (!%p1377_p9), %v2322_v19, %v2288_v38  ;;  %v1107_v35 = vadd.f32 (!%p1377_p9), %v2327_v20, %v1084_v27 }
 0x364   : > { %v1083_v25 = vmul.f32 (!%p1377_p9), %v2322_v19, %v2290_v58  ;;  %v1105_v22 = vadd.f32 (!%p1377_p9), %v2327_v20, %v1082_v21 }
 0x365   : > { %v1108_v37 = vadd.f32 (!%p1377_p9), %v2327_v20, %v1085_v28  ;;  %vm1123_vm2 = vcmp.ge.f32.partialorder (!%p1377_p9), %v1107_v35, 0.0  ;;  %v1139_v46 = vmul.f32 (!%p1377_p9), 0.01, %v1107_v35 }
 0x366   : > { %v1521_v59 = vpop.f32.mrb[20].mxu0  ;;  %v1106_v23 = vadd.f32 (!%p1377_p9), %v2327_v20, %v1083_v25  ;;  %vm1121_vm0 = vcmp.ge.f32.partialorder (!%p1377_p9), %v1105_v22, 0.0  ;;  %v1137_v45 = vmul.f32 (!%p1377_p9), 0.01, %v1105_v22 }
 0x367   : > { %v2292_v60 = vadd.f32 %v1521_v59, %v1368_v40  ;;  %v1024_v61 = vpop.f32.mrb[21].mxu0  ;;  %vm1124_vm3 = vcmp.ge.f32.partialorder (!%p1377_p9), %v1108_v37, 0.0  ;;  %v1140_v33 = vmul.f32 (!%p1377_p9), 0.01, %v1108_v37  ;;  %v1155_v48 = vsel (!%p1377_p9), %vm1123_vm2, %v1107_v35, %v1139_v46 }
 0x368   : > { %v2294_v62 = vadd.f32 %v1368_v40, %v1024_v61  ;;  %v1522_v63 = vpop.f32.mrb[22].mxu0  ;;  %vm1122_vm1 = vcmp.ge.f32.partialorder (!%p1377_p9), %v1106_v23, 0.0  ;;  %v1138_v31 = vmul.f32 (!%p1377_p9), 0.01, %v1106_v23  ;;  %v1153_v47 = vsel (!%p1377_p9), %vm1121_vm0, %v1105_v22, %v1137_v45  ;;  %1171 = vst [vmem:[#allocation2 + $0x10] sm:$0xff] (!%p1377_p9), %v1155_v48 }
 0x369   : > { %v2296_v0 = vadd.f32 %v1522_v63, %v1368_v40  ;;  %v1027_v1 = vpop.f32.mrb[23].mxu0  ;;  %v1088_v26 = vmul.f32 (!%p1377_p9), %v2322_v19, %v2292_v60  ;;  %1169 = vst [vmem:[#allocation2] sm:$0xff] (!%p1377_p9), %v1153_v47  ;;  %v1156_v49 = vsel (!%p1377_p9), %vm1124_vm3, %v1108_v37, %v1140_v33 }
 0x36a   : > { %v2298_v2 = vadd.f32 %v1368_v40, %v1027_v1  ;;  %v1086_v32 = vmul.f32 (!%p1377_p9), %v2322_v19, %v2294_v62  ;;  %v1154_v29 = vsel (!%p1377_p9), %vm1122_vm1, %v1106_v23, %v1138_v31  ;;  %1172 = vst [vmem:[#allocation2 + $0x18] sm:$0xff] (!%p1377_p9), %v1156_v49 }
 0x36b   : > { %v1089_v34 = vmul.f32 (!%p1377_p9), %v2322_v19, %v2296_v0  ;;  %v1111_v43 = vadd.f32 (!%p1377_p9), %v2327_v20, %v1088_v26  ;;  %1170 = vst [vmem:[#allocation2 + $0x8] sm:$0xff] (!%p1377_p9), %v1154_v29 }
 0x36c   : > { %v1087_v24 = vmul.f32 (!%p1377_p9), %v2322_v19, %v2298_v2  ;;  %v1109_v39 = vadd.f32 (!%p1377_p9), %v2327_v20, %v1086_v32 }
 0x36d   : > { %v1112_v44 = vadd.f32 (!%p1377_p9), %v2327_v20, %v1089_v34  ;;  %vm1127_vm6 = vcmp.ge.f32.partialorder (!%p1377_p9), %v1111_v43, 0.0  ;;  %v1143_v52 = vmul.f32 (!%p1377_p9), 0.01, %v1111_v43 }
 0x36e   : > { %v1525_v3 = vpop.f32.mrb[16].mxu1  ;;  %v1110_v42 = vadd.f32 (!%p1377_p9), %v2327_v20, %v1087_v24  ;;  %vm1125_vm4 = vcmp.ge.f32.partialorder (!%p1377_p9), %v1109_v39, 0.0  ;;  %v1141_v30 = vmul.f32 (!%p1377_p9), 0.01, %v1109_v39 }
 0x36f   : > { %v2300_v4 = vadd.f32 %v1525_v3, %v1368_v40  ;;  %v1040_v5 = vpop.f32.mrb[17].mxu1  ;;  %vm1128_vm7 = vcmp.ge.f32.partialorder (!%p1377_p9), %v1112_v44, 0.0  ;;  %v1159_v36 = vsel (!%p1377_p9), %vm1127_vm6, %v1111_v43, %v1143_v52 }
 0x370   : > { %v2302_v6 = vadd.f32 %v1368_v40, %v1040_v5  ;;  %v1526_v7 = vpop.f32.mrb[18].mxu1  ;;  %vm1126_vm5 = vcmp.ge.f32.partialorder (!%p1377_p9), %v1110_v42, 0.0  ;;  %v1142_v50 = vmul.f32 (!%p1377_p9), 0.01, %v1110_v42  ;;  %v1157_v51 = vsel (!%p1377_p9), %vm1125_vm4, %v1109_v39, %v1141_v30  ;;  %1175 = vst [vmem:[#allocation2 + $0x30] sm:$0xff] (!%p1377_p9), %v1159_v36 }
 0x371   : > { %v2304_v8 = vadd.f32 %v1526_v7, %v1368_v40  ;;  %v1043_v9 = vpop.f32.mrb[19].mxu1  ;;  %1173 = vst [vmem:[#allocation2 + $0x20] sm:$0xff] (!%p1377_p9), %v1157_v51  ;;  %v1092_v57 = vmul.f32 (!%p1377_p9), %v2322_v19, %v2300_v4 }
 0x372   : > { %v2306_v10 = vadd.f32 %v1368_v40, %v1043_v9  ;;  %v1158_v53 = vsel (!%p1377_p9), %vm1126_vm5, %v1110_v42, %v1142_v50  ;;  %v1090_v41 = vmul.f32 (!%p1377_p9), %v2322_v19, %v2302_v6 }
 0x373   : > { %1174 = vst [vmem:[#allocation2 + $0x28] sm:$0xff] (!%p1377_p9), %v1158_v53  ;;  %v1093_v59 = vmul.f32 (!%p1377_p9), %v2322_v19, %v2304_v8  ;;  %v1115_v7 = vadd.f32 (!%p1377_p9), %v2327_v20, %v1092_v57 }
 0x374   : > { %1074 = sbr.rel (%p1377_p9) target bundleno = 900 (0x384), region = 84  ;;  %v1091_v55 = vmul.f32 (!%p1377_p9), %v2322_v19, %v2306_v10  ;;  %v1113_v1 = vadd.f32 (!%p1377_p9), %v2327_v20, %v1090_v41 }
 0x375   : > { %v1116_v9 = vadd.f32 (!%p1377_p9), %v2327_v20, %v1093_v59  ;;  %vm1131_vm10 = vcmp.ge.f32.partialorder (!%p1377_p9), %v1115_v7, 0.0  ;;  %v1147_v21 = vmul.f32 (!%p1377_p9), 0.01, %v1115_v7 }
 0x376   : > { %v1529_v11 = vpop.f32.mrb[20].mxu1  ;;  %v1114_v3 = vadd.f32 (!%p1377_p9), %v2327_v20, %v1091_v55  ;;  %vm1129_vm8 = vcmp.ge.f32.partialorder (!%p1377_p9), %v1113_v1, 0.0 }
 0x377   : > { %v2308_v12 = vadd.f32 %v1529_v11, %v1368_v40  ;;  %v1056_v13 = vpop.f32.mrb[21].mxu1  ;;  %vm1132_vm11 = vcmp.ge.f32.partialorder (!%p1377_p9), %v1116_v9, 0.0  ;;  %v1148_v25 = vmul.f32 (!%p1377_p9), 0.01, %v1116_v9  ;;  %v1163_v24 = vsel (!%p1377_p9), %vm1131_vm10, %v1115_v7, %v1147_v21 }
 0x378   : > { %v2310_v14 = vadd.f32 %v1368_v40, %v1056_v13  ;;  %v1530_v15 = vpop.f32.mrb[22].mxu1  ;;  %vm1130_vm9 = vcmp.ge.f32.partialorder (!%p1377_p9), %v1114_v3, 0.0  ;;  %1179 = vst [vmem:[#allocation2 + $0x50] sm:$0xff] (!%p1377_p9), %v1163_v24 }
 0x379   : > { %v2312_v18 = vadd.f32 %v1530_v15, %v1368_v40  ;;  %v1059_v16 = vpop.f32.mrb[23].mxu1  ;;  %v1096_v13 = vmul.f32 (!%p1377_p9), %v2322_v19, %v2308_v12  ;;  %v1145_v15 = vmul.f32 (!%p1377_p9), 0.01, %v1113_v1  ;;  %v1164_v26 = vsel (!%p1377_p9), %vm1132_vm11, %v1116_v9, %v1148_v25 }
 0x37a   : > { %v2314_v17 = vadd.f32 %v1368_v40, %v1059_v16  ;;  %v1144_v40 = vmul.f32 (!%p1377_p9), 0.01, %v1112_v44  ;;  %v1094_v61 = vmul.f32 (!%p1377_p9), %v2322_v19, %v2310_v14  ;;  %v1146_v16 = vmul.f32 (!%p1377_p9), 0.01, %v1114_v3  ;;  %1180 = vst [vmem:[#allocation2 + $0x58] sm:$0xff] (!%p1377_p9), %v1164_v26 }
 0x37b   : > { %v1161_v27 = vsel %vm1129_vm8, %v1113_v1, %v1145_v15  ;;  %v1119_v22 = vadd.f32 %v2327_v20, %v1096_v13  ;;  %v1097_v35 = vmul.f32 %v2322_v19, %v2312_v18 }
 0x37c   : > { %v1160_v63 = vsel %vm1128_vm7, %v1112_v44, %v1144_v40  ;;  %v1095_v5 = vmul.f32 %v2322_v19, %v2314_v17  ;;  %v1117_v11 = vadd.f32 %v2327_v20, %v1094_v61  ;;  %v1162_v28 = vsel %vm1130_vm9, %v1114_v3, %v1146_v16  ;;  %1177 = vst [vmem:[#allocation2 + $0x40] sm:$0xff] %v1161_v27 }
 0x37d   : > { %1176 = vst [vmem:[#allocation2 + $0x38] sm:$0xff] %v1160_v63  ;;  %1178 = vst [vmem:[#allocation2 + $0x48] sm:$0xff] %v1162_v28  ;;  %vm1135_vm14 = vcmp.ge.f32.partialorder %v1119_v22, 0.0  ;;  %v1151_v39 = vmul.f32 0.01, %v1119_v22  ;;  %v1120_v42 = vadd.f32 %v2327_v20, %v1097_v35 }
 0x37e   : > { %vm1133_vm12 = vcmp.ge.f32.partialorder %v1117_v11, 0.0  ;;  %v1149_v32 = vmul.f32 0.01, %v1117_v11  ;;  %v1118_v34 = vadd.f32 %v2327_v20, %v1095_v5 }
 0x37f   : > { %v1167_v44 = vsel %vm1135_vm14, %v1119_v22, %v1151_v39  ;;  %vm1136_vm15 = vcmp.ge.f32.partialorder %v1120_v42, 0.0  ;;  %v1152_v45 = vmul.f32 0.01, %v1120_v42 }
 0x380   : > { %v1165_v23 = vsel %vm1133_vm12, %v1117_v11, %v1149_v32  ;;  %vm1134_vm13 = vcmp.ge.f32.partialorder %v1118_v34, 0.0  ;;  %v1150_v37 = vmul.f32 0.01, %v1118_v34  ;;  %1183 = vst [vmem:[#allocation2 + $0x70] sm:$0xff] %v1167_v44 }
 0x381   : > { %1181 = vst [vmem:[#allocation2 + $0x60] sm:$0xff] %v1165_v23  ;;  %v1168_v31 = vsel %vm1136_vm15, %v1120_v42, %v1152_v45 }
 0x382   : > { %v1166_v43 = vsel %vm1134_vm13, %v1118_v34, %v1150_v37  ;;  %1184 = vst [vmem:[#allocation2 + $0x78] sm:$0xff] %v1168_v31 }
 0x383   : > { %1182 = vst [vmem:[#allocation2 + $0x68] sm:$0xff] %v1166_v43 }
 0x384 PF: > { %p1380_p1 = scmp.ne.s32.totalorder %s1949_s13, 2 }
 0x385   : > { %1188 = vst [vmem:[#allocation12] sm:$0xff] (!%p1380_p1), %v2286_v56  ;;  %1189 = vst [vmem:[#allocation12 + $0x8] sm:$0xff] (!%p1380_p1), %v2290_v58 }
 0x386   : > { %1187 = sbr.rel (%p1380_p1) target bundleno = 909 (0x38d), region = 88  ;;  %1190 = vst [vmem:[#allocation12 + $0x10] sm:$0xff] (!%p1380_p1), %v2284_v54  ;;  %1191 = vst [vmem:[#allocation12 + $0x18] sm:$0xff] (!%p1380_p1), %v2288_v38 }
 0x387   : > { %1192 = vst [vmem:[#allocation12 + $0x20] sm:$0xff] (!%p1380_p1), %v2294_v62  ;;  %1193 = vst [vmem:[#allocation12 + $0x28] sm:$0xff] (!%p1380_p1), %v2298_v2 }
 0x388   : > { %1194 = vst [vmem:[#allocation12 + $0x30] sm:$0xff] (!%p1380_p1), %v2292_v60  ;;  %1195 = vst [vmem:[#allocation12 + $0x38] sm:$0xff] (!%p1380_p1), %v2296_v0 }
 0x389   : > { %1196 = vst [vmem:[#allocation12 + $0x40] sm:$0xff] (!%p1380_p1), %v2302_v6  ;;  %1197 = vst [vmem:[#allocation12 + $0x48] sm:$0xff] (!%p1380_p1), %v2306_v10 }
 0x38a   : > { %1198 = vst [vmem:[#allocation12 + $0x50] sm:$0xff] (!%p1380_p1), %v2300_v4  ;;  %1199 = vst [vmem:[#allocation12 + $0x58] sm:$0xff] (!%p1380_p1), %v2304_v8 }
 0x38b   : > { %1200 = vst [vmem:[#allocation12 + $0x60] sm:$0xff] (!%p1380_p1), %v2310_v14  ;;  %1201 = vst [vmem:[#allocation12 + $0x68] sm:$0xff] (!%p1380_p1), %v2314_v17 }
 0x38c   : > { %1202 = vst [vmem:[#allocation12 + $0x70] sm:$0xff] (!%p1380_p1), %v2308_v12  ;;  %1203 = vst [vmem:[#allocation12 + $0x78] sm:$0xff] (!%p1380_p1), %v2312_v18 }
 0x38d PF: > { %s1877_s15 = smov [#allocation12]  }
 0x38e   : > { %s1210_s28 = sshll.u32 %s1877_s15, 4  ;;  %s1211_s28 = int_to_ptr.vmem [resolvable:$true] %s1210_s28 }
 0x38f   : > { %s1790_s20 = scalar_lea.vmem %s1211_s28, 2048  ;;  %p1797_p0 = scmp.lt.s32.totalorder %s1211_s28, %s1211_s28 }
 0x390   : > { %p1791_p4 = scmp.ne.s32.totalorder %s1211_s28, %s1790_s20  ;;  %p1798_p6 = scmp.lt.s32.totalorder %s1790_s20, %s1790_s20 }
 0x392   : > { %p1792_p12 = pnand %p1791_p4, %p1377_p9  ;;  %p1799_p7 = por %p1798_p6, %p1797_p0 }
 0x394   : > { %p1793_p3 = pneg %p1792_p12 }
 0x396   : > { %p1800_p11 = pnand %p1799_p7, %p1793_p3 }
 0x398   : > { %1803 = shalt.err (!%p1800_p11)
}
 0x399   : > { %s2488_s11 = sld [smem:[#allocation24_spill]] }
 0x39f   : > { %s2489_s22 = smov %s2488_s11  ;;  %s1804_s30 = scalar_lea.hbm %s2488_s11, 2048 }
 0x3a0   : > { %p1805_p8 = scmp.ne.s32.totalorder %s2489_s22, %s1804_s30  ;;  %p1810_p10 = scmp.lt.u32.totalorder %s1804_s30, %s2489_s22 }
 0x3a2   : > { %p1806_p13 = pnand %p1805_p8, %p1377_p9 }
 0x3a4   : > { %p1807_p5 = pneg %p1806_p13 }
 0x3a6   : > { %p1812_p2 = pnand %p1810_p10, %p1807_p5 }
 0x3a8   : > { %1815 = shalt.err (!%p1812_p2)
}
 0x3a9   : > { %s1878_s14 = smov 128   ;;  %s1879_s12 = smov 8  }
 0x3aa   : > { %1564 = dma.vmem_to_hbm [thread:$0]  (%p1377_p9), %s1211_s28, 2048, %s2489_s22, [#allocation5], %s1878_s14, %s1878_s14, %s1879_s12  }
 0x3ab   : > { %1849 = dma.done.wait (%p1377_p9), [#allocation5], 2048  }
 0x3ac   : > { %1851 = vsyncadd (%p1377_p9), [#allocation5], 4294965248 }
 0x3ad PF: > { %s2490_s12 = sld [smem:[#allocation19_spill]]  ;;  %s2491_s0 = sld [smem:[#allocation18_spill]] }
 0x3ae   : > { %s2492_s11 = sld [smem:[#allocation20_spill]]  ;;  %s2493_s30 = smov %s1858_s10 }
 0x3b3   : > { %p20_p1 = scmp.ge.s32.totalorder %s2490_s12, 5   ;;  %s2494_s10 = smov %s2491_s0 }
 0x3b5   :  { %22 = sbr.rel (!%p20_p1) target bundleno = 10 (0xa), region = 134 }
 0x3bc   :  { %1226 = vsyncpa [#allocation4], 1 }
 0x3bd   :  { %1228 = vsyncpa [#allocation4 + $0x1], 1 }
 0x3be   :  { %1229 = vsyncpa [#allocation8], 1 }
 0x3bf   :  { %1230 = vsyncpa [#allocation5], 1 }
 0x3c0   :  { %1232 = vsyncpa [#allocation5 + $0x1], 1 }
 0x3c1   :  { %1233 = vsyncpa [#allocation6], 1 }
 0x3c2   :  { %1235 = vsyncpa [#allocation6 + $0x1], 1 }

</bundles_post_ra>
